<compile_context>
chip_gen: v7x
topology: tpu7x:2x2x1
jax: 0.10.0
libtpu: 0.0.40
codegen_flags: <defaults>
</compile_context>

<pallas_src>
import jax
import jax.numpy as jnp
from jax import lax
from jax.experimental import pallas as pl
from jax.experimental.pallas import tpu as pltpu


def _make_mlp_kernel(n_hidden, compute_dtype):
    """Kernel for n_hidden x (Linear+ReLU) followed by a 1-unit head.

    Ref order: x, (w, b) * n_hidden, w_out, b_out(SMEM), out.
    x is [TILE_B, obs_dim] (raw observation tile, f32); weights are
    [out_features, in_features] (native PyTorch layout).  All hidden
    activations live as [L, TILE_B] so batch stays on lanes and the 1-unit
    head emits a lane-dense [1, TILE_B] block.
    """

    def kernel(*refs):
        x_ref = refs[0]
        o_ref = refs[-1]
        wb = refs[1:-1]

        # In-kernel cast to the MXU compute dtype (VPU slot; wrapper is copy-free).
        x = x_ref[...].astype(compute_dtype)            # [TILE_B, obs_dim]

        h = None
        for l in range(n_hidden):
            w = wb[2 * l][...]                           # [L, in], compute_dtype
            b = wb[2 * l + 1][...]                       # [L, 1],  f32
            if l == 0:
                # Contract obs_dim of both operands: batch lands on lanes
                # without any transpose of the observation tile.
                z = lax.dot_general(w, x, (((1,), (1,)), ((), ())),
                                    preferred_element_type=jnp.float32)
            else:
                z = jnp.dot(w, h, preferred_element_type=jnp.float32)
            h = jnp.maximum(z + b, 0.0).astype(compute_dtype)   # [L, TILE_B]

        w_out = wb[2 * n_hidden][...]                    # [1, L], compute_dtype
        b_out = wb[2 * n_hidden + 1][0]                  # SMEM scalar, f32
        if n_hidden == 0:
            out = lax.dot_general(w_out, x, (((1,), (1,)), ((), ())),
                                  preferred_element_type=jnp.float32) + b_out
        else:
            out = jnp.dot(w_out, h, preferred_element_type=jnp.float32) + b_out
        o_ref[...] = out.astype(o_ref.dtype)             # lane-dense [1, TILE_B]

    return kernel


def baseline_forward(observations, params, *, tile_b=8192, compute_dtype=jnp.bfloat16):
    """Forward pass of the baseline network. Returns shape [batch] (squeezed).

    params: list of (w, b) with w=[out_features, in_features] (PyTorch layout),
            b=[out_features]; last entry is the 1-unit head.
    """
    batch, obs_dim = observations.shape
    n_hidden = len(params) - 1

    # Lane-aligned batch tile.  Large default amortizes the ~0.35 us/grid-step
    # overhead; cdiv(batch, 2*128)*128 guarantees >= 2 tiles when batch > 128
    # so both v7x TensorCores get work.  Per-step VMEM footprint stays far
    # below every generation's limit, so no VMEM-driven shrink is needed.
    tile_b = max(128, min(int(tile_b), pl.cdiv(batch, 2 * 128) * 128))
    n_tiles = pl.cdiv(batch, tile_b)
    batch_pad = n_tiles * tile_b   # output-only padding (a few KiB of writeback)

    flat_args = [observations]     # fed directly: contiguous [tile_b, obs_dim] DMA
    in_specs = [pl.BlockSpec((tile_b, obs_dim), lambda i: (i, 0))]

    for (w, b) in params[:-1]:
        w_c = w.astype(compute_dtype)                        # [out, in]
        b_c = b.reshape(b.shape[0], 1).astype(jnp.float32)   # [out, 1]
        flat_args += [w_c, b_c]
        in_specs += [
            pl.BlockSpec(w_c.shape, lambda i: (0, 0)),   # VMEM-resident across grid
            pl.BlockSpec(b_c.shape, lambda i: (0, 0)),
        ]

    w_out, b_out = params[-1]
    w_out_c = w_out.astype(compute_dtype)         # [1, L]
    b_out_c = b_out.reshape(1).astype(jnp.float32)
    flat_args += [w_out_c, b_out_c]
    in_specs += [
        pl.BlockSpec(w_out_c.shape, lambda i: (0, 0)),
        pl.BlockSpec(memory_space=pltpu.MemorySpace.SMEM),   # scalar head bias
    ]

    flops = 2 * batch_pad * sum(w.shape[0] * w.shape[1] for (w, _) in params)
    bytes_accessed = (
        observations.size * observations.dtype.itemsize
        + batch_pad * 4
        + sum(a.size * a.dtype.itemsize for a in flat_args[1:])
    )

    out = pl.pallas_call(
        _make_mlp_kernel(n_hidden, compute_dtype),
        out_shape=jax.ShapeDtypeStruct((1, batch_pad), jnp.float32),
        grid=(n_tiles,),
        in_specs=in_specs,
        out_specs=pl.BlockSpec((1, tile_b), lambda i: (0, i)),
        compiler_params=pltpu.CompilerParams(dimension_semantics=("parallel",)),
        cost_estimate=pl.CostEstimate(
            flops=flops, transcendentals=0, bytes_accessed=bytes_accessed
        ),
    )(*flat_args)

    # Drop output-tile padding and squeeze() -> 1-D [batch], matching PyTorch.
    return out[0, :batch]


def init_params(key, obs_dim, layer_size, n_layers):
    """PyTorch-style nn.Linear init; weights stored [out_features, in_features]."""
    dims = [obs_dim] + [layer_size] * n_layers + [1]
    params = []
    for fan_in, fan_out in zip(dims[:-1], dims[1:]):
        key, kw, kb = jax.random.split(key, 3)
        bound = 1.0 / float(fan_in) ** 0.5
        w = jax.random.uniform(kw, (fan_out, fan_in), jnp.float32, -bound, bound)
        b = jax.random.uniform(kb, (fan_out,), jnp.float32, -bound, bound)
        params.append((w, b))
    return params


def reference_forward(observations, params, compute_dtype=jnp.bfloat16):
    """Plain-JAX reference with the same bf16-operand / f32-accumulate recipe."""
    h = observations.astype(compute_dtype)
    for (w, b) in params[:-1]:
        h = jnp.dot(h, w.T.astype(compute_dtype), preferred_element_type=jnp.float32) + b
        h = jnp.maximum(h, 0.0).astype(compute_dtype)
    w_out, b_out = params[-1]
    out = jnp.dot(h, w_out.T.astype(compute_dtype), preferred_element_type=jnp.float32) + b_out
    return out.reshape(-1)   # squeeze()


if __name__ == "__main__":
    # Small shapes implied by the module: observations [batch, dim(obs)] -> [batch].
    batch = 200        # not a multiple of 128 -> exercises multi-tile + partial tile
    obs_dim = 16       # dim(observation space)
    layer_size = 64    # config['hyper_params']['layer_size']
    n_layers = 2       # config['hyper_params']['n_layers']

    key = jax.random.PRNGKey(0)
    k_obs, k_par = jax.random.split(key)

    observations = jax.random.normal(k_obs, (batch, obs_dim), dtype=jnp.float32)
    params = init_params(k_par, obs_dim, layer_size, n_layers)

    out = baseline_forward(observations, params)
    out = jax.block_until_ready(out)

    ref = reference_forward(observations, params)
    assert out.ndim == 1 and out.shape == (batch,), out.shape
    assert jnp.allclose(out, ref, atol=1e-3, rtol=1e-3), float(jnp.max(jnp.abs(out - ref)))

    print("KERNEL_OK")
</pallas_src>

<mosaic_0001>
module attributes {stable_mosaic.version = 11 : i64} {
  func.func @kernel(%arg0: i32, %arg1: memref<128x16xf32, #tpu.memory_space<vmem>>, %arg2: memref<64x16xbf16, #tpu.memory_space<vmem>>, %arg3: memref<64x1xf32, #tpu.memory_space<vmem>>, %arg4: memref<64x64xbf16, #tpu.memory_space<vmem>>, %arg5: memref<64x1xf32, #tpu.memory_space<vmem>>, %arg6: memref<1x64xbf16, #tpu.memory_space<vmem>>, %arg7: memref<1xf32, #tpu.memory_space<smem>>, %arg8: memref<1x128xf32, #tpu.memory_space<vmem>>) attributes {dimension_semantics = [#tpu.dimension_semantics<parallel>], iteration_bounds = array<i64: 2>, scalar_prefetch = 0 : i64, scratch_operands = 0 : i64, tpu.core_type = #tpu.core_type<tc>, window_params = [{transform_indices = @transform_0, window_bounds = array<i64: 128, 16>}, {pipeline_mode = #tpu.pipeline_mode<synchronous>, transform_indices = @transform_1, window_bounds = array<i64: 64, 16>}, {pipeline_mode = #tpu.pipeline_mode<synchronous>, transform_indices = @transform_2, window_bounds = array<i64: 64, 1>}, {pipeline_mode = #tpu.pipeline_mode<synchronous>, transform_indices = @transform_3, window_bounds = array<i64: 64, 64>}, {pipeline_mode = #tpu.pipeline_mode<synchronous>, transform_indices = @transform_4, window_bounds = array<i64: 64, 1>}, {pipeline_mode = #tpu.pipeline_mode<synchronous>, transform_indices = @transform_5, window_bounds = array<i64: 1, 64>}, {transform_indices = @transform_6, window_bounds = array<i64: 1>}, {transform_indices = @transform_7, window_bounds = array<i64: 1, 128>}]} {
    %c0 = arith.constant 0 : index
    %c0_0 = arith.constant 0 : index
    %0 = vector.load %arg1[%c0, %c0_0] : memref<128x16xf32, #tpu.memory_space<vmem>>, vector<128x16xf32>
    %1 = arith.truncf %0 : vector<128x16xf32> to vector<128x16xbf16>
    %c0_1 = arith.constant 0 : index
    %c0_2 = arith.constant 0 : index
    %2 = vector.load %arg2[%c0_1, %c0_2] : memref<64x16xbf16, #tpu.memory_space<vmem>>, vector<64x16xbf16>
    %c0_3 = arith.constant 0 : index
    %c0_4 = arith.constant 0 : index
    %3 = vector.load %arg3[%c0_3, %c0_4] : memref<64x1xf32, #tpu.memory_space<vmem>>, vector<64x1xf32>
    %cst = arith.constant dense<0.000000e+00> : vector<64x128xf32>
    %4 = tpu.matmul %2, %1, %cst {dimension_numbers = #tpu.dot_dimension_numbers<[1], [1], [0], [0], [0, 0, 1, 0], [], []>} : vector<64x16xbf16>, vector<128x16xbf16>, vector<64x128xf32> -> vector<64x128xf32>
    %5 = vector.broadcast %3 : vector<64x1xf32> to vector<64x128xf32>
    %6 = arith.addf %4, %5 : vector<64x128xf32>
    %cst_5 = arith.constant 0.000000e+00 : f32
    %7 = vector.broadcast %cst_5 : f32 to vector<64x128xf32>
    %8 = arith.maximumf %6, %7 : vector<64x128xf32>
    %9 = arith.truncf %8 : vector<64x128xf32> to vector<64x128xbf16>
    %c0_6 = arith.constant 0 : index
    %c0_7 = arith.constant 0 : index
    %10 = vector.load %arg4[%c0_6, %c0_7] : memref<64x64xbf16, #tpu.memory_space<vmem>>, vector<64x64xbf16>
    %c0_8 = arith.constant 0 : index
    %c0_9 = arith.constant 0 : index
    %11 = vector.load %arg5[%c0_8, %c0_9] : memref<64x1xf32, #tpu.memory_space<vmem>>, vector<64x1xf32>
    %cst_10 = arith.constant dense<0.000000e+00> : vector<64x128xf32>
    %12 = tpu.matmul %10, %9, %cst_10 {dimension_numbers = #tpu.dot_dimension_numbers<[1], [0], [0], [1], [0, 0, 1, 1], [], []>} : vector<64x64xbf16>, vector<64x128xbf16>, vector<64x128xf32> -> vector<64x128xf32>
    %13 = vector.broadcast %11 : vector<64x1xf32> to vector<64x128xf32>
    %14 = arith.addf %12, %13 : vector<64x128xf32>
    %cst_11 = arith.constant 0.000000e+00 : f32
    %15 = vector.broadcast %cst_11 : f32 to vector<64x128xf32>
    %16 = arith.maximumf %14, %15 : vector<64x128xf32>
    %17 = arith.truncf %16 : vector<64x128xf32> to vector<64x128xbf16>
    %c0_12 = arith.constant 0 : index
    %c0_13 = arith.constant 0 : index
    %18 = vector.load %arg6[%c0_12, %c0_13] : memref<1x64xbf16, #tpu.memory_space<vmem>>, vector<1x64xbf16>
    %c0_14 = arith.constant 0 : index
    %19 = memref.load %arg7[%c0_14] : memref<1xf32, #tpu.memory_space<smem>>
    %cst_15 = arith.constant dense<0.000000e+00> : vector<1x128xf32>
    %20 = tpu.matmul %18, %17, %cst_15 {dimension_numbers = #tpu.dot_dimension_numbers<[1], [0], [0], [1], [0, 0, 1, 1], [], []>} : vector<1x64xbf16>, vector<64x128xbf16>, vector<1x128xf32> -> vector<1x128xf32>
    %21 = vector.broadcast %19 : f32 to vector<1x128xf32>
    %22 = arith.addf %20, %21 : vector<1x128xf32>
    %c0_16 = arith.constant 0 : index
    %c0_17 = arith.constant 0 : index
    %23 = vector.load %arg8[%c0_16, %c0_17] : memref<1x128xf32, #tpu.memory_space<vmem>>, vector<1x128xf32>
    tpu.vector_store %arg8[%c0_16, %c0_17], %22 {strides = array<i32>} : memref<1x128xf32, #tpu.memory_space<vmem>>, vector<1x128xf32>,
    return
  }
  func.func @transform_0(%arg0: i32) -> (i32, i32) {
    %c0_i32 = arith.constant 0 : i32
    %c0_i32_0 = arith.constant 0 : i32
    return %arg0, %c0_i32 : i32, i32
  }
  func.func @transform_1(%arg0: i32) -> (i32, i32) {
    %c0_i32 = arith.constant 0 : i32
    %c0_i32_0 = arith.constant 0 : i32
    %c0_i32_1 = arith.constant 0 : i32
    return %c0_i32, %c0_i32_0 : i32, i32
  }
  func.func @transform_2(%arg0: i32) -> (i32, i32) {
    %c0_i32 = arith.constant 0 : i32
    %c0_i32_0 = arith.constant 0 : i32
    %c0_i32_1 = arith.constant 0 : i32
    return %c0_i32, %c0_i32_0 : i32, i32
  }
  func.func @transform_3(%arg0: i32) -> (i32, i32) {
    %c0_i32 = arith.constant 0 : i32
    %c0_i32_0 = arith.constant 0 : i32
    %c0_i32_1 = arith.constant 0 : i32
    return %c0_i32, %c0_i32_0 : i32, i32
  }
  func.func @transform_4(%arg0: i32) -> (i32, i32) {
    %c0_i32 = arith.constant 0 : i32
    %c0_i32_0 = arith.constant 0 : i32
    %c0_i32_1 = arith.constant 0 : i32
    return %c0_i32, %c0_i32_0 : i32, i32
  }
  func.func @transform_5(%arg0: i32) -> (i32, i32) {
    %c0_i32 = arith.constant 0 : i32
    %c0_i32_0 = arith.constant 0 : i32
    %c0_i32_1 = arith.constant 0 : i32
    return %c0_i32, %c0_i32_0 : i32, i32
  }
  func.func @transform_6(%arg0: i32) -> i32 {
    %c0_i32 = arith.constant 0 : i32
    %c0_i32_0 = arith.constant 0 : i32
    return %c0_i32 : i32
  }
  func.func @transform_7(%arg0: i32) -> (i32, i32) {
    %c0_i32 = arith.constant 0 : i32
    %c0_i32_0 = arith.constant 0 : i32
    return %c0_i32, %arg0 : i32, i32
  }
}

</mosaic_0001>

<bundles_post_ra>
// kernel: tpu_custom_call.1
= control target key start
LH: loop header
LB: loop body
LE: loop exit
PB: predicated region body
PF: predicated region fallthrough
CT: control target
= control target key end

     0   :  { %s1286_s0 = inlined_call_operand.vmem [shape: f32[200,16], index: 0, kind: input, shape index: {}]   ;;  %s1287_s1 = inlined_call_operand.vmem [shape: bf16[64,16], index: 1, kind: input, shape index: {}]   ;;  %s1288_s2 = inlined_call_operand.vmem [shape: f32[64,1], index: 2, kind: input, shape index: {}]   ;;  %s1289_s3 = inlined_call_operand.vmem [shape: bf16[64,64], index: 3, kind: input, shape index: {}]   ;;  %s1290_s4 = inlined_call_operand.vmem [shape: f32[64,1], index: 4, kind: input, shape index: {}]   ;;  %s1291_s5 = inlined_call_operand.vmem [shape: bf16[1,64], index: 5, kind: input, shape index: {}]   ;;  %s1292_s6 = inlined_call_operand.<no memory space> [shape: f32[1], index: 6, kind: input, shape index: {}]   ;;  %s1293_s7 = inlined_call_operand.hbm [shape: f32[1,256], index: 7, kind: output, shape index: {}]  }
   0x1   :  { %12 = sst [smem:[#allocation2]] %s1292_s6 }
   0x2   :  { %13 = vsyncpa [#allocation4], 0 }
   0x3   :  { %15 = vsyncpa [#allocation4 + $0x1], 0  ;;  %s1069_s26 = smov 0   ;;  %s1071_s27 = smov 0  }
   0x4   :  { %s1073_s28 = smov 0   ;;  %s1075_s29 = smov 0  }
   0x5 LB: > { %s794_s6 = sadd.s32 4294967295, %s1020_s29   ;;  %s795_s30 = sadd.s32 4294967294, %s1020_s29   ;;  %s1020_s29 = sphi %s1075_s29, %s1299_s29   ;;  %s1016_s28 = sphi %s1073_s28, %s1298_s28   ;;  %s1012_s27 = sphi %s1071_s27, %s1297_s27   ;;  %s1008_s26 = sphi %s1069_s26, %s1296_s26  }
   0x6   : > { %s1092_s8 = sadd.s32 1, %s1020_s29   ;;  %s180_s9 = sadd.s32 1, %s1016_s28 }
   0x7   : > { %s177_s10 = ssub.s32 %s1020_s29, %s1092_s8  ;;  %p190_p0 = scmp.ne.s32.totalorder %s1016_s28, %s1012_s27 }
   0x8   : > { %p178_p1 = scmp.eq.s32.totalorder %s177_s10, 0  ;;  %p191_p2 = scmp.eq.s32.totalorder %s794_s6, 1 }
   0x9   : > { %p196_p3 = scmp.ne.s32.totalorder %s1012_s27, %s1008_s26  ;;  %p197_p4 = scmp.eq.s32.totalorder %s795_s30, 1 }
   0xa   : > { %s1102_s11 = scalar_select %p178_p1, %s1016_s28, %s180_s9  }
   0xb   : > { %p1104_p5 = por %p191_p2, %p190_p0  ;;  %p1108_p6 = por %p197_p4, %p196_p3 }
   0xc   : > { %p798_p7 = scmp.ge.s32.totalorder %s1020_s29, 1  ;;  %p250_p8 = scmp.lt.s32.totalorder %s1020_s29, 3 }
   0xe   : > { %p251_p9 = pnand %p798_p7, %p250_p8 }
   0xf   : > { %s1114_s14 = sshll.u32 (!%p251_p9), %s794_s6, 4  ;;  %v950_v0 = vld [vmem:[%s1287_s1] sm:$0xff] (!%p251_p9)   ;;  %vm400_vm0 = vcmask (!%p251_p9), 130048   ;;  %v1022_v1 = vmov (!%p251_p9), 0   ;;  %v334_v3 = vld [vmem:[%s1288_s2 + $0x10] sm:$0xff] (!%p251_p9)  ;;  %v333_v4 = vld [vmem:[%s1288_s2 + $0x8] sm:$0xff] (!%p251_p9) }
  0x10   : > { %254 = sbr.rel (%p251_p9) target bundleno = 795 (0x31b), region = 48  ;;  %p290_p10 = scmp.lt.s32.totalorder (!%p251_p9), %s1114_s14, 24  ;;  %862 = vmatprep.mubr.msk.bf16.mxu0 (!%p251_p9), %vm400_vm0, %v950_v0  ;;  %948 = vset.pattern.permute.xlu0 (!%p251_p9), %v1022_v1  ;;  %v332_v2 = vld [vmem:[%s1288_s2] sm:$0xff] (!%p251_p9)  ;;  %v335_v5 = vld [vmem:[%s1288_s2 + $0x18] sm:$0xff] (!%p251_p9)  ;;  %v337_v14 = vld [vmem:[%s1288_s2 + $0x28] sm:$0xff] (!%p251_p9)  ;;  %vm590_vm1 = vcmask (!%p251_p9), 523264  }
  0x11   : > { %949 = vset.pattern.permute.xlu1 (!%p251_p9), %v1022_v1  ;;  %342 = vperm.xlu0 (!%p251_p9), %948, %v332_v2   ;;  %v336_v13 = vld [vmem:[%s1288_s2 + $0x20] sm:$0xff] (!%p251_p9)  ;;  %v338_v17 = vld [vmem:[%s1288_s2 + $0x30] sm:$0xff] (!%p251_p9)  ;;  %v339_v18 = vld [vmem:[%s1288_s2 + $0x38] sm:$0xff] (!%p251_p9)  ;;  %vm1024_vm2 = vmmov (!%p251_p9), 0   ;;  %s681_s30 = sld [smem:[#allocation2]] (!%p251_p9)  ;;  %s283_s9 = sand.u32 (!%p251_p9), 1, %s1012_s27  }
  0x12   : > { %352 = vperm.xlu1 (!%p251_p9), %949, %v334_v3   ;;  %v522_v21 = vld [vmem:[%s1290_s4] sm:$0xff] (!%p251_p9)  ;;  %v523_v22 = vld [vmem:[%s1290_s4 + $0x8] sm:$0xff] (!%p251_p9)  ;;  %v524_v25 = vld [vmem:[%s1290_s4 + $0x10] sm:$0xff] (!%p251_p9)  ;;  %s284_s10 = scalar_lea.vmem (!%p251_p9), [#allocation3], %s283_s9  ;;  %s728_s18 = scalar_lea.sflag (!%p251_p9), [#allocation4], %s283_s9 }
  0x13   : > { %v525_v26 = vld [vmem:[%s1290_s4 + $0x18] sm:$0xff] (!%p251_p9)  ;;  %v526_v29 = vld [vmem:[%s1290_s4 + $0x20] sm:$0xff] (!%p251_p9)  ;;  %v527_v30 = vld [vmem:[%s1290_s4 + $0x28] sm:$0xff] (!%p251_p9)  ;;  %s1025_s20 = smov (!%p251_p9), [#allocation3]  }
  0x14   : > { %v528_v33 = vld [vmem:[%s1290_s4 + $0x30] sm:$0xff] (!%p251_p9)  ;;  %v529_v34 = vld [vmem:[%s1290_s4 + $0x38] sm:$0xff] (!%p251_p9)  ;;  %v951_v50 = vld [vmem:[%s1287_s1 + $0x8] sm:$0xff] (!%p251_p9)   ;;  %s962_s21 = sshll.u32 (!%p251_p9), %s1025_s20, 4  ;;  %s963_s21 = int_to_ptr.vmem [resolvable:$false] %s962_s21 }
  0x15   : > { %347 = vperm.xlu0 (!%p251_p9), %948, %v333_v4   ;;  %v952_v51 = vld [vmem:[%s1287_s1 + $0x10] sm:$0xff] (!%p251_p9)   ;;  %v953_v52 = vld [vmem:[%s1287_s1 + $0x18] sm:$0xff] (!%p251_p9)   ;;  %v954_v53 = vld [vmem:[%s1289_s3] sm:$0xff] (!%p251_p9)  }
  0x16   : > { %357 = vperm.xlu1 (!%p251_p9), %949, %v335_v5   ;;  %878 = vmatprep.mubr.msk.bf16.mxu1 (!%p251_p9), %vm590_vm1, %v954_v53 }
  0x17   : > { %s291_s17 = scalar_select %p290_p10, %s1114_s14, 24 }
  0x19   : > { %s800_s22 = sshll.u32 %s291_s17, 3  ;;  %362 = vperm.xlu0 %948, %v336_v13   ;;  %s1244_s17 = scalar_lea.hbm %s1293_s7, %s1114_s14 }
  0x1a   : > { %s1131_s25 = scalar_lea.vmem %s1286_s0, %s800_s22  ;;  %367 = vperm.xlu1 %949, %v337_v14   ;;  %s964_s22 = scalar_lea.vmem %s963_s21, 32 }
  0x1b   : > { %v300_v6 = vld [vmem:[%s1131_s25] sm:$0xff]  ;;  %v301_v7 = vld [vmem:[%s1131_s25 + $0x8] sm:$0xff]  ;;  %v302_v8 = vld [vmem:[%s1131_s25 + $0x10] sm:$0xff] }
  0x1c   : > { %v316_v9 = vpack.c.bf16 %v301_v7, %v300_v6  ;;  %v303_v10 = vld [vmem:[%s1131_s25 + $0x18] sm:$0xff]  ;;  %v304_v15 = vld [vmem:[%s1131_s25 + $0x20] sm:$0xff]  ;;  %v305_v16 = vld [vmem:[%s1131_s25 + $0x28] sm:$0xff] }
  0x1d   : > { %v317_v11 = vpack.c.bf16 %v303_v10, %v302_v8  ;;  %v318_v20 = vpack.c.bf16 %v305_v16, %v304_v15  ;;  %372 = vperm.xlu0 %948, %v338_v17   ;;  %v306_v23 = vld [vmem:[%s1131_s25 + $0x30] sm:$0xff]  ;;  %v307_v24 = vld [vmem:[%s1131_s25 + $0x38] sm:$0xff]  ;;  %v308_v31 = vld [vmem:[%s1131_s25 + $0x40] sm:$0xff] }
  0x1e   : > { %898 = vmatprep.subr.msk.bf16.mxu0 %vm400_vm0, %v316_v9  ;;  %v414_v12 = vsel %vm400_vm0, %v316_v9, 0  ;;  %377 = vperm.xlu1 %949, %v339_v18   ;;  %v319_v28 = vpack.c.bf16 %v307_v24, %v306_v23  ;;  %v309_v32 = vld [vmem:[%s1131_s25 + $0x48] sm:$0xff]  ;;  %v310_v37 = vld [vmem:[%s1131_s25 + $0x50] sm:$0xff]  ;;  %v311_v38 = vld [vmem:[%s1131_s25 + $0x58] sm:$0xff] }
  0x1f   : > { %847 = vmatpush3.bf16.xpose.msra.mxu0 %v414_v12  ;;  %v417_v19 = vsel %vm400_vm0, %v317_v11, 0  ;;  %v420_v27 = vsel %vm400_vm0, %v318_v20, 0  ;;  %v320_v36 = vpack.c.bf16 %v309_v32, %v308_v31  ;;  %v321_v40 = vpack.c.bf16 %v311_v38, %v310_v37  ;;  %v312_v41 = vld [vmem:[%s1131_s25 + $0x60] sm:$0xff]  ;;  %v313_v42 = vld [vmem:[%s1131_s25 + $0x68] sm:$0xff]  ;;  %v314_v45 = vld [vmem:[%s1131_s25 + $0x70] sm:$0xff] }
  0x20   : > { %899 = vmatprep.subr.msk.bf16.mxu0 %vm400_vm0, %v317_v11  ;;  %v423_v35 = vsel %vm400_vm0, %v319_v28, 0  ;;  %v322_v44 = vpack.c.bf16 %v313_v42, %v312_v41  ;;  %v315_v46 = vld [vmem:[%s1131_s25 + $0x78] sm:$0xff]  ;;  %s740_s25 = sshll.u32 %s284_s10, 4  ;;  %s1246_s25 = int_to_ptr.vmem [resolvable:$true] %s740_s25 }
  0x21   : > { %532 = vperm.xlu0 %948, %v522_v21   ;;  %v426_v39 = vsel %vm400_vm0, %v320_v36, 0  ;;  %v429_v43 = vsel %vm400_vm0, %v321_v40, 0  ;;  %v323_v48 = vpack.c.bf16 %v315_v46, %v314_v45  ;;  %s958_s19 = scalar_lea.vmem %s1246_s25, 16  ;;  %p965_p0 = scmp.lt.s32.totalorder %s1246_s25, %s963_s21 }
  0x22   : > { %537 = vperm.xlu1 %949, %v523_v22   ;;  %v432_v47 = vsel %vm400_vm0, %v322_v44, 0  ;;  %p959_p11 = scmp.ne.s32.totalorder %s1246_s25, %s958_s19  ;;  %p966_p1 = scmp.lt.s32.totalorder %s964_s22, %s958_s19 }
  0x23   : > { %v435_v49 = vsel %vm400_vm0, %v323_v48, 0 }
  0x24   : > { %p960_p12 = pnand %p959_p11, %p1104_p5  ;;  %p967_p2 = por %p966_p1, %p965_p0 }
  0x25   : > { %542 = vperm.xlu0 %948, %v524_v25  }
  0x26   : > { %547 = vperm.xlu1 %949, %v525_v26   ;;  %v955_v26 = vld [vmem:[%s1289_s3 + $0x8] sm:$0xff]   ;;  %p961_p13 = pneg %p960_p12 }
  0x27   : > { %849 = vmatpush3.bf16.xpose.msra.mxu0 %v417_v19 }
  0x28   : > { %900 = vmatprep.subr.msk.bf16.mxu0 %vm400_vm0, %v318_v20  ;;  %p968_p3 = pnand %p967_p2, %p961_p13 }
  0x29   : > { %552 = vperm.xlu0 %948, %v526_v29   ;;  %v1023_v29 = vmov 0.0  }
  0x2a   : > { %557 = vperm.xlu1 %949, %v527_v30  }
  0x2d   : > { %562 = vperm.xlu0 %948, %v528_v33  }
  0x2e   : > { %567 = vperm.xlu1 %949, %v529_v34  }
  0x2f   : > { %851 = vmatpush3.bf16.xpose.msra.mxu0 %v420_v27  ;;  %v956_v27 = vld [vmem:[%s1289_s3 + $0x10] sm:$0xff]  }
  0x30   : > { %901 = vmatprep.subr.msk.bf16.mxu0 %vm400_vm0, %v319_v28  ;;  %v957_v28 = vld [vmem:[%s1289_s3 + $0x18] sm:$0xff]  }
  0x37   : > { %853 = vmatpush3.bf16.xpose.msra.mxu0 %v423_v35 }
  0x38   : > { %902 = vmatprep.subr.msk.bf16.mxu0 %vm400_vm0, %v320_v36 }
  0x3f   : > { %855 = vmatpush3.bf16.xpose.msra.mxu0 %v426_v39 }
  0x40   : > { %903 = vmatprep.subr.msk.bf16.mxu0 %vm400_vm0, %v321_v40 }
  0x47   : > { %857 = vmatpush3.bf16.xpose.msra.mxu0 %v429_v43 }
  0x48   : > { %904 = vmatprep.subr.msk.bf16.mxu0 %vm400_vm0, %v322_v44 }
  0x4f   : > { %859 = vmatpush3.bf16.xpose.msra.mxu0 %v432_v47 }
  0x50   : > { %905 = vmatprep.subr.msk.bf16.mxu0 %vm400_vm0, %v323_v48 }
  0x57   : > { %861 = vmatpush3.bf16.xpose.msra.mxu0 %v435_v49 }
  0x5e   : > { %863 = vmatmul.mubr.msk.bf16.vlgmr.msra.gmra.mrb[0].mxu0 %vm400_vm0, %v951_v50 }
  0x5f   : > { %866 = vmatprep.mubr.msk.bf16.mxu0 %vm400_vm0, %v952_v51 }
  0x66   : > { %867 = vmatmul.mubr.msk.bf16.gmra.mrb[4].mxu0 %vm400_vm0, %v953_v52 }
  0x90   : > { %v343_v54 = vpop.permute.xlu0 %342 }
  0x91   : > { %v353_v55 = vpop.permute.xlu1 %352 }
  0x94   : > { %v348_v56 = vpop.permute.xlu0 %347 }
  0x95   : > { %v358_v57 = vpop.permute.xlu1 %357 }
  0x98   : > { %v363_v61 = vpop.permute.xlu0 %362 }
  0x99   : > { %v368_v2 = vpop.permute.xlu1 %367 }
  0x9c   : > { %v373_v9 = vpop.permute.xlu0 %372 }
  0x9d   : > { %v378_v14 = vpop.permute.xlu1 %377 }
  0xa0   : > { %v533_v30 = vpop.permute.xlu0 %532 }
  0xa1   : > { %v538_v31 = vpop.permute.xlu1 %537 }
  0xa4   : > { %v543_v32 = vpop.permute.xlu0 %542 }
  0xa5   : > { %v548_v33 = vpop.permute.xlu1 %547 }
  0xa8   : > { %v553_v37 = vpop.permute.xlu0 %552 }
  0xa9   : > { %v558_v42 = vpop.permute.xlu1 %557 }
  0xac   : > { %v563_v49 = vpop.permute.xlu0 %562 }
 0x131   : > { %v864_v58 = vpop.f32.mrb[0].mxu0 }
 0x132   : > { %v480_v59 = vadd.f32 %v864_v58, %v353_v55  ;;  %v471_v60 = vpop.f32.mrb[1].mxu0 }
 0x133   : > { %v472_v62 = vadd.f32 %v471_v60, %v343_v54  ;;  %v865_v63 = vpop.f32.mrb[2].mxu0  ;;  %v568_v54 = vpop.permute.xlu1 %567 }
 0x134   : > { %v483_v0 = vadd.f32 %v865_v63, %v358_v57  ;;  %v474_v1 = vpop.f32.mrb[3].mxu0  ;;  %v504_v4 = vmax.f32 %v480_v59, 0.0 }
 0x135   : > { %v475_v3 = vadd.f32 %v474_v1, %v348_v56  ;;  %v502_v6 = vmax.f32 %v472_v62, 0.0 }
 0x136   : > { %v505_v5 = vmax.f32 %v483_v0, 0.0 }
 0x137   : > { %v503_v7 = vmax.f32 %v475_v3, 0.0  ;;  %v682_v3 = vstv %s681_s30 }
 0x138   : > { %v511_v8 = vpack.c.bf16 %v505_v5, %v504_v4 }
 0x139   : > { %v868_v10 = vpop.f32.mrb[4].mxu0  ;;  %v510_v11 = vpack.c.bf16 %v503_v7, %v502_v6 }
 0x13a   : > { %v496_v12 = vadd.f32 %v868_v10, %v373_v9  ;;  %v487_v13 = vpop.f32.mrb[5].mxu0 }
 0x13b   : > { %v488_v15 = vadd.f32 %v487_v13, %v363_v61  ;;  %v869_v16 = vpop.f32.mrb[6].mxu0  ;;  %870 = vmatprep.subr.bf16.mxu1 %v510_v11 }
 0x13c   : > { %v499_v17 = vadd.f32 %v869_v16, %v378_v14  ;;  %v490_v18 = vpop.f32.mrb[7].mxu0  ;;  %871 = vmatpush3.bf16.msra.mxu1 %v510_v11  ;;  %v508_v20 = vmax.f32 %v496_v12, 0.0 }
 0x13d   : > { %v491_v19 = vadd.f32 %v490_v18, %v368_v2  ;;  %872 = vmatprep.subr.bf16.mxu1 %v511_v8  ;;  %v506_v22 = vmax.f32 %v488_v15, 0.0  ;;  %v680_v2 = vld [vmem:[%s1291_s5] sm:$0x1] }
 0x13e   : > { %v509_v21 = vmax.f32 %v499_v17, 0.0 }
 0x13f   : > { %v507_v23 = vmax.f32 %v491_v19, 0.0 }
 0x140   : > { %v513_v24 = vpack.c.bf16 %v509_v21, %v508_v20  ;;  %873 = vmatpush3.bf16.msra.mxu1 %v511_v8 }
 0x141   : > { %v512_v25 = vpack.c.bf16 %v507_v23, %v506_v22 }
 0x143   : > { %874 = vmatprep.subr.bf16.mxu1 %v512_v25 }
 0x144   : > { %875 = vmatpush3.bf16.msra.mxu1 %v512_v25 }
 0x145   : > { %876 = vmatprep.subr.bf16.mxu1 %v513_v24 }
 0x148   : > { %877 = vmatpush3.bf16.msra.mxu1 %v513_v24 }
 0x149   : > { %886 = vmatprep.subr.bf16.mxu1 %v1023_v29 }
 0x14b   : > { %879 = vmatmul.mubr.msk.bf16.vlgmr.msra.gmra.mrb[0].mxu1 %vm590_vm1, %v955_v26 }
 0x14c   : > { %882 = vmatprep.mubr.msk.bf16.mxu1 %vm590_vm1, %v956_v27 }
 0x153   : > { %883 = vmatmul.mubr.msk.bf16.gmra.mrb[4].mxu1 %vm590_vm1, %v957_v28 }
 0x154   : > { %894 = vmatprep.mubr.msk.bf16.mxu1 %vm1024_vm2, %v1023_v29 }
 0x21e   : > { %v880_v34 = vpop.f32.mrb[0].mxu1 }
 0x21f   : > { %v646_v35 = vadd.f32 %v880_v34, %v543_v32  ;;  %v637_v36 = vpop.f32.mrb[1].mxu1 }
 0x220   : > { %v638_v38 = vadd.f32 %v637_v36, %v533_v30  ;;  %v881_v39 = vpop.f32.mrb[2].mxu1 }
 0x221   : > { %v649_v40 = vadd.f32 %v881_v39, %v548_v33  ;;  %v640_v41 = vpop.f32.mrb[3].mxu1  ;;  %v670_v44 = vmax.f32 %v646_v35, 0.0 }
 0x222   : > { %v641_v43 = vadd.f32 %v640_v41, %v538_v31  ;;  %v668_v46 = vmax.f32 %v638_v38, 0.0 }
 0x223   : > { %v671_v45 = vmax.f32 %v649_v40, 0.0 }
 0x224   : > { %v669_v47 = vmax.f32 %v641_v43, 0.0 }
 0x225   : > { %v677_v48 = vpack.c.bf16 %v671_v45, %v670_v44 }
 0x226   : > { %v676_v50 = vpack.c.bf16 %v669_v47, %v668_v46  ;;  %v884_v51 = vpop.f32.mrb[4].mxu1 }
 0x227   : > { %v662_v52 = vadd.f32 %v884_v51, %v563_v49  ;;  %v653_v53 = vpop.f32.mrb[5].mxu1 }
 0x228   : > { %v654_v55 = vadd.f32 %v653_v53, %v553_v37  ;;  %v885_v56 = vpop.f32.mrb[6].mxu1  ;;  %887 = vmatpush3.bf16.msra.mxu1 %v676_v50 }
 0x229   : > { %v665_v57 = vadd.f32 %v885_v56, %v568_v54  ;;  %v656_v58 = vpop.f32.mrb[7].mxu1  ;;  %888 = vmatprep.subr.bf16.mxu1 %v1023_v29  ;;  %v674_v60 = vmax.f32 %v662_v52, 0.0 }
 0x22a   : > { %v657_v59 = vadd.f32 %v656_v58, %v558_v42  ;;  %v672_v62 = vmax.f32 %v654_v55, 0.0 }
 0x22b   : > { %v675_v61 = vmax.f32 %v665_v57, 0.0 }
 0x22c   : > { %v673_v63 = vmax.f32 %v657_v59, 0.0  ;;  %889 = vmatpush3.bf16.msra.mxu1 %v677_v48 }
 0x22d   : > { %v679_v0 = vpack.c.bf16 %v675_v61, %v674_v60  ;;  %890 = vmatprep.subr.bf16.mxu1 %v1023_v29 }
 0x22e   : > { %v678_v1 = vpack.c.bf16 %v673_v63, %v672_v62 }
 0x230   : > { %891 = vmatpush3.bf16.msra.mxu1 %v678_v1 }
 0x231   : > { %892 = vmatprep.subr.bf16.mxu1 %v1023_v29 }
 0x234   : > { %893 = vmatpush3.bf16.msra.mxu1 %v679_v0 }
 0x237   : > { %895 = vmatmul.mubr.msk.bf16.vlgmr.msra.gmra.mrb[8].mxu1 %vm590_vm1, %v680_v2 }
 0x30a   : > { %v720_v4 = vpop.f32.mrb[8].mxu1 }
 0x30b   : > { %v721_v5 = vadd.f32 %v720_v4, %v682_v3  ;;  %v896_v6 = vpop.f32.mrb[9].mxu1 }
 0x30c   : > { %v723_v7 = vpop.f32.mrb[10].mxu1 }
 0x30d   : > { %726 = vst [vmem:[%s284_s10] sm:$0x1] %v721_v5  ;;  %v897_v8 = vpop.f32.mrb[11].mxu1 }
 0x30e   : > { %971 = shalt.err (!%p968_p3)
}
 0x30f   : > { %s972_s14 = scalar_lea.hbm %s1244_s17, 16  ;;  %s976_s6 = scalar_lea.hbm %s1293_s7, 32 }
 0x310   : > { %p973_p4 = scmp.ne.s32.totalorder %s1244_s17, %s972_s14  ;;  %p977_p9 = scmp.lt.u32.totalorder %s1244_s17, %s1293_s7 }
 0x311   : > { %p978_p10 = scmp.lt.u32.totalorder %s976_s6, %s972_s14  ;;  %p980_p12 = scmp.lt.u32.totalorder %s972_s14, %s1244_s17 }
 0x312   : > { %p974_p7 = pnand %p973_p4, %p1104_p5 }
 0x313   : > { %p979_p11 = por %p978_p10, %p977_p9 }
 0x314   : > { %p975_p8 = pneg %p974_p7 }
 0x315   : > { %p981_p13 = por %p980_p12, %p979_p11 }
 0x317   : > { %p982_p0 = pnand %p981_p13, %p975_p8 }
 0x319   : > { %985 = shalt.err (!%p982_p0)
}
 0x31a   : > { %906 = dma.vmem_to_hbm [thread:$0]  (%p1104_p5), %s1246_s25, 16, %s1244_s17, %s728_s18  }
 0x31b PF: > { %p912_p1 = scmp.ge.s32.totalorder %s1020_s29, 2  ;;  %s752_s10 = sand.u32 1, %s1008_s26  }
 0x31c   : > { %s753_s15 = scalar_lea.sflag [#allocation4], %s752_s10 }
 0x31d   : > { %p909_p2 = pnand %p912_p1, %p1108_p6 }
 0x31f   : > { %1003 = dma.done.wait (!%p909_p2), %s753_s15, 16  }
 0x320   : > { %1005 = vsyncadd (!%p909_p2), %s753_s15, 4294967280  ;;  %p18_p3 = scmp.ge.s32.totalorder %s1092_s8, 4   ;;  %s1296_s26 = smov %s1012_s27 }
 0x321   : > { %s1297_s27 = smov %s1016_s28  ;;  %s1298_s28 = smov %s1102_s11 }
 0x322   : > { %s1299_s29 = smov %s1092_s8  ;;  %20 = sbr.rel (!%p18_p3) target bundleno = 5 (0x5), region = 83 }
 0x329   :  { %757 = vsyncpa [#allocation4], 1 }
 0x32a   :  { %759 = vsyncpa [#allocation4 + $0x1], 1 }

</bundles_post_ra>
